<compile_context>
chip_gen: v7x
topology: tpu7x:2x2x1
jax: 0.10.0
libtpu: 0.0.40
codegen_flags: <defaults>
</compile_context>

<pallas_src>
import jax
import jax.numpy as jnp
from jax.experimental import pallas as pl
from jax.experimental.pallas import tpu as pltpu


def _intra_att_kernel(h_ref, hr_ref, w_hr_ref, w_h_ref, out_ref, att_ref):
    # h_ref / hr_ref : (N, D)  neighbor / reference embeddings (batch squeezed)
    # w_hr_ref       : (1, D)  att-param half that pairs with h_refer
    # w_h_ref        : (1, D)  att-param half that pairs with h
    # out_ref        : (1, D)  weighted neighbor sum
    # att_ref        : (N, 1)  softmax attention weights
    h = h_ref[...].astype(jnp.float32)
    hr = hr_ref[...].astype(jnp.float32)
    w_h = w_h_ref[...].astype(jnp.float32)     # (1, D), broadcast over N
    w_hr = w_hr_ref[...].astype(jnp.float32)   # (1, D)

    # logits[n] = sum_d ( hr[n,d]*w_hr[d] + h[n,d]*w_h[d] )  -> (N, 1)
    # (identical to cat([hr, h], -1) @ att.T, but exact f32 on the VPU + a
    #  lane reduction on the XLU instead of a sub-MXU-granularity matmul).
    logits = jnp.sum(hr * w_hr + h * w_h, axis=-1, keepdims=True)

    # LeakyReLU (PyTorch default negative_slope = 0.01).
    logits = jnp.where(logits > 0, logits, 0.01 * logits)

    # Softmax over the neighbor (sublane) axis, exact f32.
    m = jnp.max(logits, axis=0, keepdims=True)          # (1, 1)
    e = jnp.exp(logits - m)                              # (N, 1)
    denom = jnp.sum(e, axis=0, keepdims=True)            # (1, 1)
    att = e / denom                                       # (N, 1)

    # Weighted neighbor sum: sum_n att[n] * h[n, :]  -> (1, D).
    out = jnp.sum(att * h, axis=0, keepdims=True)

    out_ref[...] = out.astype(out_ref.dtype)
    att_ref[...] = att.astype(att_ref.dtype)


def intra_att_batched(h, h_refer, att_param):
    """Batched intra_att forward.

    h, h_refer : (B, N, D)   (h_refer may be broadcastable to (B, N, D))
    att_param  : (1, 2*D)
    returns    : (out (B, D), att (B, N, 1))
    """
    B, N, D = h.shape
    h_refer = jnp.broadcast_to(h_refer, (B, N, D))
    # Split the attention vector outside the kernel (free) so the kernel does
    # no unaligned lane slicing. First half pairs with h_refer, second with h.
    w_hr = att_param[:, :D]
    w_h = att_param[:, D:]

    out3, att3 = pl.pallas_call(
        _intra_att_kernel,
        out_shape=(
            jax.ShapeDtypeStruct((B, 1, D), h.dtype),
            jax.ShapeDtypeStruct((B, N, 1), jnp.float32),
        ),
        grid=(B,),
        in_specs=[
            pl.BlockSpec((None, N, D), lambda b: (b, 0, 0)),
            pl.BlockSpec((None, N, D), lambda b: (b, 0, 0)),
            pl.BlockSpec((1, D), lambda b: (0, 0)),
            pl.BlockSpec((1, D), lambda b: (0, 0)),
        ],
        out_specs=(
            pl.BlockSpec((None, 1, D), lambda b: (b, 0, 0)),
            pl.BlockSpec((None, N, 1), lambda b: (b, 0, 0)),
        ),
        compiler_params=pltpu.CompilerParams(
            dimension_semantics=("parallel",),
            vmem_limit_bytes=32 * 1024 * 1024),
    )(h, h_refer, w_hr, w_h)

    return out3.reshape(B, D), att3


def intra_att_forward(nei, h, h_refer, att_param):
    """JAX/Pallas equivalent of intra_att.forward (attn_drop = 0).

    h        : (N, D)
    h_refer  : (N, D)  (or broadcastable to it)
    att_param: (1, 2*D)
    returns  : (nei_emb (1, D), att (1, N, 1))
    """
    del nei  # unused by the reference forward
    N, D = h.shape
    h_refer = jnp.broadcast_to(h_refer, (N, D))
    out, att = intra_att_batched(h[None], h_refer[None], att_param)
    return out, att


def _reference_batched(h, h_refer, att_param):
    """Pure-JAX reference mirroring the PyTorch code, batched over B.

    Written without matmuls so it is exact f32 on any backend."""
    all_emb = jnp.concatenate([h_refer, h], axis=-1)                  # (B, N, 2D)
    logits = jnp.sum(all_emb * att_param, axis=-1, keepdims=True)     # (B, N, 1)
    logits = jnp.where(logits > 0, logits, 0.01 * logits)
    att = jax.nn.softmax(logits, axis=1)
    out = jnp.sum(att * h, axis=1)                                    # (B, D)
    return out, att


if __name__ == "__main__":
    key = jax.random.PRNGKey(0)
    B, N, D = 4, 8, 32                 # 4 independent problems, 8 neighbors, hidden_dim=32
    k1, k2, k3 = jax.random.split(key, 3)

    h = jax.random.normal(k1, (B, N, D), dtype=jnp.float32)
    h_refer = jax.random.normal(k2, (B, N, D), dtype=jnp.float32)

    # Deterministic xavier_normal_ init of self.att (shape (1, 2*hidden_dim)),
    # gain=1.414: std = gain * sqrt(2 / (fan_in + fan_out)), fan_in=2D, fan_out=1.
    gain = 1.414
    std = gain * jnp.sqrt(2.0 / (2 * D + 1))
    att_param = std * jax.random.normal(k3, (1, 2 * D), dtype=jnp.float32)

    # Batched kernel (one grid step per problem).
    out, att = intra_att_batched(h, h_refer, att_param)
    out = jax.block_until_ready(out)
    att = jax.block_until_ready(att)

    ref_out, ref_att = _reference_batched(h, h_refer, att_param)
    assert out.shape == (B, D) and att.shape == (B, N, 1)
    assert jnp.allclose(out, ref_out, atol=1e-4, rtol=1e-4)
    assert jnp.allclose(att, ref_att, atol=1e-4, rtol=1e-4)

    # Single-problem wrapper matching the nn.Module signature/outputs.
    nei = jnp.arange(N, dtype=jnp.int32)    # unused by forward, kept for signature
    out1, att1 = intra_att_forward(nei, h[0], h_refer[0], att_param)
    out1 = jax.block_until_ready(out1)
    att1 = jax.block_until_ready(att1)
    ref_out1, ref_att1 = _reference_batched(h[:1], h_refer[:1], att_param)
    assert out1.shape == (1, D) and att1.shape == (1, N, 1)
    assert jnp.allclose(out1, ref_out1, atol=1e-4, rtol=1e-4)
    assert jnp.allclose(att1, ref_att1, atol=1e-4, rtol=1e-4)

    print("KERNEL_OK")
</pallas_src>

<mosaic_0001>
module attributes {stable_mosaic.version = 11 : i64} {
  func.func @_intra_att_kernel(%arg0: i32, %arg1: memref<1x8x32xf32, #tpu.memory_space<vmem>>, %arg2: memref<1x8x32xf32, #tpu.memory_space<vmem>>, %arg3: memref<1x32xf32, #tpu.memory_space<vmem>>, %arg4: memref<1x32xf32, #tpu.memory_space<vmem>>, %arg5: memref<1x1x32xf32, #tpu.memory_space<vmem>>, %arg6: memref<1x8x1xf32, #tpu.memory_space<vmem>>) attributes {dimension_semantics = [#tpu.dimension_semantics<parallel>], iteration_bounds = array<i64: 4>, scalar_prefetch = 0 : i64, scratch_operands = 0 : i64, tpu.core_type = #tpu.core_type<tc>, window_params = [{transform_indices = @transform_0, window_bounds = array<i64: 1, 8, 32>}, {transform_indices = @transform_1, window_bounds = array<i64: 1, 8, 32>}, {pipeline_mode = #tpu.pipeline_mode<synchronous>, transform_indices = @transform_2, window_bounds = array<i64: 1, 32>}, {pipeline_mode = #tpu.pipeline_mode<synchronous>, transform_indices = @transform_3, window_bounds = array<i64: 1, 32>}, {transform_indices = @transform_4, window_bounds = array<i64: 1, 1, 32>}, {transform_indices = @transform_5, window_bounds = array<i64: 1, 8, 1>}]} {
    %c0 = arith.constant 0 : index
    %c0_0 = arith.constant 0 : index
    %c0_1 = arith.constant 0 : index
    %0 = vector.load %arg1[%c0, %c0_0, %c0_1] : memref<1x8x32xf32, #tpu.memory_space<vmem>>, vector<1x8x32xf32>
    %1 = vector.shape_cast %0 : vector<1x8x32xf32> to vector<8x32xf32>
    %c0_2 = arith.constant 0 : index
    %c0_3 = arith.constant 0 : index
    %c0_4 = arith.constant 0 : index
    %2 = vector.load %arg2[%c0_2, %c0_3, %c0_4] : memref<1x8x32xf32, #tpu.memory_space<vmem>>, vector<1x8x32xf32>
    %3 = vector.shape_cast %2 : vector<1x8x32xf32> to vector<8x32xf32>
    %c0_5 = arith.constant 0 : index
    %c0_6 = arith.constant 0 : index
    %4 = vector.load %arg4[%c0_5, %c0_6] : memref<1x32xf32, #tpu.memory_space<vmem>>, vector<1x32xf32>
    %c0_7 = arith.constant 0 : index
    %c0_8 = arith.constant 0 : index
    %5 = vector.load %arg3[%c0_7, %c0_8] : memref<1x32xf32, #tpu.memory_space<vmem>>, vector<1x32xf32>
    %6 = vector.broadcast %5 : vector<1x32xf32> to vector<8x32xf32>
    %7 = arith.mulf %3, %6 : vector<8x32xf32>
    %8 = vector.broadcast %4 : vector<1x32xf32> to vector<8x32xf32>
    %9 = arith.mulf %1, %8 : vector<8x32xf32>
    %10 = arith.addf %7, %9 : vector<8x32xf32>
    %cst = arith.constant dense<0.000000e+00> : vector<8xf32>
    %11 = vector.multi_reduction <add>, %10, %cst [1] : vector<8x32xf32> to vector<8xf32>
    %12 = vector.shape_cast %11 : vector<8xf32> to vector<8x1xf32>
    %cst_9 = arith.constant 0.000000e+00 : f32
    %13 = vector.broadcast %cst_9 : f32 to vector<8x1xf32>
    %14 = arith.cmpf ogt, %12, %13 : vector<8x1xf32>
    %cst_10 = arith.constant 0.00999999977 : f32
    %15 = vector.broadcast %cst_10 : f32 to vector<8x1xf32>
    %16 = arith.mulf %15, %12 : vector<8x1xf32>
    %17 = arith.select %14, %12, %16 : vector<8x1xi1>, vector<8x1xf32>
    %cst_11 = arith.constant dense<0xFF800000> : vector<1xf32>
    %18 = vector.multi_reduction <maximumf>, %17, %cst_11 [0] : vector<8x1xf32> to vector<1xf32>
    %19 = vector.shape_cast %18 : vector<1xf32> to vector<1x1xf32>
    %20 = vector.broadcast %19 : vector<1x1xf32> to vector<8x1xf32>
    %21 = arith.subf %17, %20 : vector<8x1xf32>
    %22 = math.exp %21 : vector<8x1xf32>
    %cst_12 = arith.constant dense<0.000000e+00> : vector<1xf32>
    %23 = vector.multi_reduction <add>, %22, %cst_12 [0] : vector<8x1xf32> to vector<1xf32>
    %24 = vector.shape_cast %23 : vector<1xf32> to vector<1x1xf32>
    %25 = vector.broadcast %24 : vector<1x1xf32> to vector<8x1xf32>
    %26 = arith.divf %22, %25 : vector<8x1xf32>
    %27 = vector.broadcast %26 : vector<8x1xf32> to vector<8x32xf32>
    %28 = arith.mulf %27, %1 : vector<8x32xf32>
    %cst_13 = arith.constant dense<0.000000e+00> : vector<32xf32>
    %29 = vector.multi_reduction <add>, %28, %cst_13 [0] : vector<8x32xf32> to vector<32xf32>
    %30 = vector.shape_cast %29 : vector<32xf32> to vector<1x32xf32>
    %c0_14 = arith.constant 0 : index
    %c0_15 = arith.constant 0 : index
    %c0_16 = arith.constant 0 : index
    %31 = vector.load %arg5[%c0_14, %c0_15, %c0_16] : memref<1x1x32xf32, #tpu.memory_space<vmem>>, vector<1x1x32xf32>
    %32 = vector.shape_cast %31 : vector<1x1x32xf32> to vector<1x32xf32>
    %33 = vector.shape_cast %30 : vector<1x32xf32> to vector<1x1x32xf32>
    tpu.vector_store %arg5[%c0_14, %c0_15, %c0_16], %33 {strides = array<i32>} : memref<1x1x32xf32, #tpu.memory_space<vmem>>, vector<1x1x32xf32>,
    %c0_17 = arith.constant 0 : index
    %c0_18 = arith.constant 0 : index
    %c0_19 = arith.constant 0 : index
    %34 = vector.load %arg6[%c0_17, %c0_18, %c0_19] : memref<1x8x1xf32, #tpu.memory_space<vmem>>, vector<1x8x1xf32>
    %35 = vector.shape_cast %34 : vector<1x8x1xf32> to vector<8x1xf32>
    %36 = vector.shape_cast %26 : vector<8x1xf32> to vector<1x8x1xf32>
    tpu.vector_store %arg6[%c0_17, %c0_18, %c0_19], %36 {strides = array<i32>} : memref<1x8x1xf32, #tpu.memory_space<vmem>>, vector<1x8x1xf32>,
    return
  }
  func.func @transform_0(%arg0: i32) -> (i32, i32, i32) {
    %c0_i32 = arith.constant 0 : i32
    %c0_i32_0 = arith.constant 0 : i32
    %c0_i32_1 = arith.constant 0 : i32
    return %arg0, %c0_i32, %c0_i32_0 : i32, i32, i32
  }
  func.func @transform_1(%arg0: i32) -> (i32, i32, i32) {
    %c0_i32 = arith.constant 0 : i32
    %c0_i32_0 = arith.constant 0 : i32
    %c0_i32_1 = arith.constant 0 : i32
    return %arg0, %c0_i32, %c0_i32_0 : i32, i32, i32
  }
  func.func @transform_2(%arg0: i32) -> (i32, i32) {
    %c0_i32 = arith.constant 0 : i32
    %c0_i32_0 = arith.constant 0 : i32
    %c0_i32_1 = arith.constant 0 : i32
    return %c0_i32, %c0_i32_0 : i32, i32
  }
  func.func @transform_3(%arg0: i32) -> (i32, i32) {
    %c0_i32 = arith.constant 0 : i32
    %c0_i32_0 = arith.constant 0 : i32
    %c0_i32_1 = arith.constant 0 : i32
    return %c0_i32, %c0_i32_0 : i32, i32
  }
  func.func @transform_4(%arg0: i32) -> (i32, i32, i32) {
    %c0_i32 = arith.constant 0 : i32
    %c0_i32_0 = arith.constant 0 : i32
    %c0_i32_1 = arith.constant 0 : i32
    return %arg0, %c0_i32, %c0_i32_0 : i32, i32, i32
  }
  func.func @transform_5(%arg0: i32) -> (i32, i32, i32) {
    %c0_i32 = arith.constant 0 : i32
    %c0_i32_0 = arith.constant 0 : i32
    %c0_i32_1 = arith.constant 0 : i32
    return %arg0, %c0_i32, %c0_i32_0 : i32, i32, i32
  }
}

</mosaic_0001>

<bundles_post_ra>
// kernel: tpu_custom_call.1
= control target key start
LH: loop header
LB: loop body
LE: loop exit
PB: predicated region body
PF: predicated region fallthrough
CT: control target
= control target key end

     0   :  { %11 = vsyncpa [#allocation3], 0  ;;  %s932_s0 = inlined_call_operand.hbm [shape: f32[4,8,32], index: 0, kind: input, shape index: {}]   ;;  %s933_s1 = inlined_call_operand.hbm [shape: f32[4,8,32], index: 1, kind: input, shape index: {}]   ;;  %s934_s2 = inlined_call_operand.vmem [shape: f32[1,32], index: 2, kind: input, shape index: {}]   ;;  %s935_s3 = inlined_call_operand.vmem [shape: f32[1,32], index: 3, kind: input, shape index: {}]   ;;  %s936_s4 = inlined_call_operand.hbm [shape: f32[4,1,32], index: 4, kind: output, shape index: {0}]   ;;  %s937_s5 = inlined_call_operand.vmem [shape: f32[4,8,1], index: 5, kind: output, shape index: {1}]  }
   0x1   :  { %13 = vsyncpa [#allocation3 + $0x1], 0 }
   0x2   :  { %14 = vsyncpa [#allocation6], 0 }
   0x3   :  { %16 = vsyncpa [#allocation6 + $0x1], 0 }
   0x4   :  { %17 = vsyncpa [#allocation4], 0 }
   0x5   :  { %19 = vsyncpa [#allocation4 + $0x1], 0  ;;  %s711_s18 = smov 0   ;;  %s713_s19 = smov 0  }
   0x6   :  { %s715_s20 = smov 0   ;;  %s717_s21 = smov 0  }
   0x7 LB: > { %s732_s22 = sadd.s32 4294967295, %s676_s21   ;;  %s475_s23 = sadd.s32 4294967294, %s676_s21   ;;  %s676_s21 = sphi %s717_s21, %s955_s21   ;;  %s672_s20 = sphi %s715_s20, %s954_s20   ;;  %s668_s19 = sphi %s713_s19, %s953_s19   ;;  %s664_s18 = sphi %s711_s18, %s952_s18  }
   0x8   : > { %s736_s24 = sadd.s32 1, %s676_s21   ;;  %s32_s25 = sadd.s32 1, %s672_s20 }
   0x9   : > { %s29_s26 = ssub.s32 %s676_s21, %s736_s24  ;;  %p39_p0 = scmp.ne.s32.totalorder %s672_s20, %s668_s19 }
   0xa   : > { %p30_p1 = scmp.eq.s32.totalorder %s29_s26, 0  ;;  %p40_p2 = scmp.eq.s32.totalorder %s676_s21, 0 }
   0xb   : > { %p45_p3 = scmp.ne.s32.totalorder %s668_s19, %s664_s18  ;;  %p46_p4 = scmp.eq.s32.totalorder %s732_s22, 0 }
   0xc   : > { %s748_s27 = scalar_select %p30_p1, %s672_s20, %s32_s25  }
   0xd   : > { %p750_p5 = por %p40_p2, %p39_p0  ;;  %p754_p6 = por %p46_p4, %p45_p3 }
   0xe   : > { %p137_p7 = scmp.eq.s32.totalorder %s732_s22, 3  ;;  %p143_p8 = scmp.eq.s32.totalorder %s475_s23, 3 }
   0xf   : > { %s941_s29 = scalar_select %p754_p6, 1, 0 }
  0x10   : > { %p508_p9 = scmp.lt.s32.totalorder %s676_s21, 4  ;;  %p760_p10 = por %p137_p7, %p39_p0 }
  0x11   : > { %p764_p11 = por %p143_p8, %p45_p3  ;;  %s769_s7 = sand.u32 1, %s672_s20  }
  0x12   : > { %s942_s30 = scalar_select %p760_p10, 1, 0 }
  0x13   : > { %s943_s6 = scalar_select %p764_p11, 1, 0 }
  0x14   : > { %s479_s8 = sshll.u32 %s676_s21, 7  ;;  %s478_s9 = sshll.u32 %s769_s7, 3 }
  0x15   : > { %s778_s12 = scalar_lea.hbm %s932_s0, %s479_s8  ;;  %s199_s13 = scalar_lea.vmem [#allocation2], %s478_s9 }
  0x16   : > { %s206_s14 = sshll.u32 %s199_s13, 4  ;;  %p784_p12 = pnand %p508_p9, %p750_p5  ;;  %s788_s14 = int_to_ptr.vmem [resolvable:$true] %s206_s14 }
  0x17   : > { %s196_s16 = scalar_lea.sflag [#allocation3], %s769_s7  ;;  %s546_s17 = scalar_lea.hbm %s778_s12, 128 }
  0x18   : > { %p547_p1 = scmp.ne.s32.totalorder %s778_s12, %s546_s17  ;;  %p548_p2 = pneg %p784_p12 }
  0x19   : > { %s551_s26 = scalar_lea.hbm %s932_s0, 512  ;;  %p552_p5 = scmp.lt.u32.totalorder %s778_s12, %s932_s0 }
  0x1a   : > { %p549_p3 = pnand %p548_p2, %p547_p1  ;;  %p553_p7 = scmp.lt.u32.totalorder %s551_s26, %s546_s17 }
  0x1b   : > { %p555_p9 = scmp.lt.u32.totalorder %s546_s17, %s778_s12 }
  0x1c   : > { %p550_p4 = pneg %p549_p3  ;;  %p554_p8 = por %p553_p7, %p552_p5 }
  0x1e   : > { %p556_p13 = por %p555_p9, %p554_p8 }
  0x20   : > { %p557_p0 = pnand %p556_p13, %p550_p4 }
  0x22   : > { %560 = shalt.err (!%p557_p0)
}
  0x23   : > { %s561_s11 = scalar_lea.vmem %s788_s14, 128  ;;  %s678_s13 = smov [#allocation2]  }
  0x24   : > { %p562_p1 = scmp.ne.s32.totalorder %s788_s14, %s561_s11  ;;  %s566_s23 = sshll.u32 %s678_s13, 4  ;;  %s567_s23 = int_to_ptr.vmem [resolvable:$false] %s566_s23 }
  0x25   : > { %s568_s25 = scalar_lea.vmem %s567_s23, 256  ;;  %p569_p10 = scmp.lt.s32.totalorder %s788_s14, %s567_s23 }
  0x26   : > { %p564_p3 = pnand %p562_p1, %p548_p2  ;;  %p570_p5 = scmp.lt.s32.totalorder %s568_s25, %s561_s11 }
  0x28   : > { %p565_p11 = pneg %p564_p3  ;;  %p571_p7 = por %p570_p5, %p569_p10 }
  0x2a   : > { %p572_p8 = pnand %p571_p7, %p565_p11 }
  0x2c   : > { %575 = shalt.err (!%p572_p8)
}
  0x2d   : > { %500 = dma.hbm_to_vmem [thread:$0]  (!%p784_p12), %s778_s12, 128, %s788_s14, %s196_s16  }
  0x2e   : > { %p945_p13 = scmp.lt.s32.totalorder %s676_s21, 5  ;;  %p946_p0 = scmp.ge.s32.totalorder %s676_s21, 1 }
  0x2f   : > { %s831_s10 = scalar_lea.hbm %s933_s1, %s479_s8  ;;  %s217_s11 = scalar_lea.vmem [#allocation5], %s478_s9 }
  0x30   : > { %p822_p4 = pnand %p946_p0, %p945_p13  ;;  %s224_s13 = sshll.u32 %s217_s11, 4  ;;  %s225_s13 = int_to_ptr.vmem [resolvable:$true] %s224_s13 }
  0x31   : > { %s214_s12 = scalar_lea.sflag [#allocation6], %s769_s7  ;;  %s576_s14 = scalar_lea.hbm %s831_s10, 128 }
  0x32   : > { %s947_s17 = scalar_select %p822_p4, 1, 0 }
  0x33   : > { %p577_p10 = scmp.ne.s32.totalorder %s831_s10, %s576_s14  ;;  %s581_s8 = scalar_lea.hbm %s933_s1, 512 }
  0x34   : > { %p582_p1 = scmp.lt.u32.totalorder %s831_s10, %s933_s1  ;;  %p583_p3 = scmp.lt.u32.totalorder %s581_s8, %s576_s14 }
  0x35   : > { %p579_p11 = pnand %p577_p10, %p548_p2  ;;  %p585_p7 = scmp.lt.u32.totalorder %s576_s14, %s831_s10 }
  0x36   : > { %p584_p5 = por %p583_p3, %p582_p1 }
  0x37   : > { %p580_p9 = pneg %p579_p11 }
  0x38   : > { %p586_p8 = por %p585_p7, %p584_p5 }
  0x3a   : > { %p587_p13 = pnand %p586_p8, %p580_p9 }
  0x3c   : > { %590 = shalt.err (!%p587_p13)
}
  0x3d   : > { %s591_s7 = scalar_lea.vmem %s225_s13, 128  ;;  %s679_s9 = smov [#allocation5]  }
  0x3e   : > { %p592_p0 = scmp.ne.s32.totalorder %s225_s13, %s591_s7  ;;  %s596_s28 = sshll.u32 %s679_s9, 4  ;;  %s597_s28 = int_to_ptr.vmem [resolvable:$false] %s596_s28 }
  0x3f   : > { %s598_s11 = scalar_lea.vmem %s597_s28, 256  ;;  %p599_p6 = scmp.lt.s32.totalorder %s225_s13, %s597_s28 }
  0x40   : > { %p594_p10 = pnand %p592_p0, %p548_p2  ;;  %p600_p4 = scmp.lt.s32.totalorder %s598_s11, %s591_s7 }
  0x42   : > { %p595_p11 = pneg %p594_p10  ;;  %p601_p1 = por %p600_p4, %p599_p6 }
  0x44   : > { %p602_p3 = pnand %p601_p1, %p595_p11 }
  0x46   : > { %605 = shalt.err (!%p602_p3)
}
  0x47   : > { %503 = dma.hbm_to_vmem [thread:$0]  (!%p784_p12), %s831_s10, 128, %s225_s13, %s214_s12  }
  0x48   : > { %p948_p9 = scmp.ne.s32.totalorder %s947_s17, 0 }
  0x49   : > { %s858_s14 = sand.u32 (!%p948_p9), 1, %s668_s19   ;;  %p949_p2 = scmp.ne.s32.totalorder (!%p948_p9), %s941_s29, 0 }
  0x4a   : > { %233 = sbr.rel (%p948_p9) target bundleno = 318 (0x13e), region = 36  ;;  %s483_s16 = sshll.u32 (!%p948_p9), %s858_s14, 3 }
  0x4b   : > { %s236_s23 = scalar_lea.sflag (!%p948_p9), [#allocation3], %s858_s14  ;;  %s239_s8 = scalar_lea.vmem (!%p948_p9), [#allocation2], %s483_s16 }
  0x51   : > { %651 = dma.done.wait (%p949_p2), %s236_s23, 128  }
  0x52   : > { %653 = vsyncadd (%p949_p2), %s236_s23, 4294967168  ;;  %s245_s15 = scalar_lea.sflag [#allocation6], %s858_s14  ;;  %s248_s10 = scalar_lea.vmem [#allocation5], %s483_s16 }
  0x53   : > { %655 = dma.done.wait (%p949_p2), %s245_s15, 128  }
  0x54   : > { %657 = vsyncadd (%p949_p2), %s245_s15, 4294967168  ;;  %v287_v0 = vld [vmem:[%s239_s8] sm:$0xff]  ;;  %v288_v1 = vld [vmem:[%s248_s10] sm:$0xff]  ;;  %vm306_vm0 = vcmask 261120   ;;  %p283_p6 = scmp.lt.s32.totalorder %s732_s22, 3  ;;  %vm340_vm2 = vcmask 7168  }
  0x55   : > { %v487_v2 = vld [vmem:[%s935_s3] ss:$0 sm:$0xff]  ;;  %s488_s11 = sshll.u32 %s732_s22, 4  ;;  %s276_s16 = scalar_lea.vmem [#allocation7], %s858_s14  ;;  %vm338_vm3 = vcmask 253952  }
  0x56   : > { %v486_v3 = vld [vmem:[%s934_s2] ss:$0 sm:$0xff]  ;;  %v304_v4 = vmul.f32 %v487_v2, %v287_v0  ;;  %s284_s29 = scalar_select %p283_p6, %s732_s22, 3 }
  0x57   : > { %v297_v5 = vmul.f32 %v486_v3, %v288_v1  ;;  %s359_s23 = sshll.u32 %s276_s16, 4  ;;  %s889_s10 = scalar_lea.hbm %s936_s4, %s488_s11  ;;  %s891_s23 = int_to_ptr.vmem [resolvable:$true] %s359_s23 }
  0x58   : > { %s485_s26 = sshll.u32 %s284_s29, 3  ;;  %s343_s17 = scalar_lea.sflag [#allocation4], %s858_s14 }
  0x59   : > { %v305_v6 = vadd.f32 %v304_v4, %v297_v5  ;;  %s286_s28 = scalar_lea.vmem %s937_s5, %s485_s26  ;;  %s606_s13 = scalar_lea.vmem %s891_s23, 16 }
  0x5a   : > { %p607_p12 = scmp.ne.s32.totalorder %s891_s23, %s606_s13  ;;  %p950_p4 = scmp.ne.s32.totalorder %s942_s30, 0 }
  0x5b   : > { %v307_v7 = vsel %vm306_vm0, %v305_v6, 0.0  ;;  %s680_s22 = smov [#allocation7]  }
  0x5c   : > { %308 = vadd.xlane.f32.xlu0 %v307_v7  ;;  %p608_p5 = pnand %p607_p12, %p950_p4  ;;  %s610_s12 = sshll.u32 %s680_s22, 4  ;;  %s611_s12 = int_to_ptr.vmem [resolvable:$false] %s610_s12 }
  0x5d   : > { %s612_s25 = scalar_lea.vmem %s611_s12, 32  ;;  %p613_p8 = scmp.lt.s32.totalorder %s891_s23, %s611_s12 }
  0x5e   : > { %p609_p7 = pneg %p608_p5  ;;  %p614_p13 = scmp.lt.s32.totalorder %s612_s25, %s606_s13 }
  0x60   : > { %p615_p0 = por %p614_p13, %p613_p8 }
  0x62   : > { %p616_p10 = pnand %p615_p0, %p609_p7 }
  0xe9   : > { %v309_v8 = vpop.xlane.xlu0 %308 }
  0xea   : > { %vm310_vm1 = vcmp.gt.f32.partialorder %v309_v8, 0.0  ;;  %v311_v9 = vmul.f32 0.01, %v309_v8 }
  0xec   : > { %v312_v10 = vsel %vm310_vm1, %v309_v8, %v311_v9 }
  0xed   : > { %v313_v11 = vrot.slane %v312_v10, 4 }
  0xef   : > { %v314_v12 = vmax.f32 %v312_v10, %v313_v11 }
  0xf1   : > { %v315_v13 = vrot.slane %v314_v12, 2 }
  0xf3   : > { %v316_v14 = vmax.f32 %v314_v12, %v315_v13 }
  0xf5   : > { %v317_v15 = vrot.slane %v316_v14, 1 }
  0xf7   : > { %v318_v16 = vmax.f32 %v316_v14, %v317_v15 }
  0xf9   : > { %v319_v17 = vsub.f32 %v312_v10, %v318_v16 }
  0xfb   : > { %v320_v18 = vmul.f32 1.442695, %v319_v17 }
  0xfd   : > { %542 = vpow2.f32 %v320_v18 }
 0x107   : > { %v543_v19 = vpop.eup %542 }
 0x108   : > { %v322_v20 = vrot.slane %v543_v19, 4 }
 0x10a   : > { %v323_v21 = vadd.f32 %v543_v19, %v322_v20 }
 0x10c   : > { %v324_v22 = vrot.slane %v323_v21, 2 }
 0x10e   : > { %v325_v23 = vadd.f32 %v324_v22, %v323_v21 }
 0x110   : > { %v326_v24 = vrot.slane %v325_v23, 1 }
 0x112   : > { %v327_v25 = vadd.f32 %v326_v24, %v325_v23 }
 0x114   : > { %544 = vrcp.f32 %v327_v25 }
 0x11e   : > { %v545_v26 = vpop.eup %544 }
 0x11f   : > { %v329_v27 = vmul.f32 %v545_v26, %v543_v19 }
 0x121   : > { %v330_v28 = vmul.f32 %v329_v27, %v287_v0  ;;  %341 = vst.msk [vmem:[%s286_s28] sm:$0xff] %vm340_vm2, %v329_v27 }
 0x123   : > { %v331_v29 = vsel %vm306_vm0, %v330_v28, 0.0 }
 0x124   : > { %v332_v30 = vrot.slane %v331_v29, 4 }
 0x126   : > { %v333_v31 = vadd.f32 %v332_v30, %v331_v29 }
 0x128   : > { %v334_v32 = vrot.slane %v333_v31, 2 }
 0x12a   : > { %v335_v33 = vadd.f32 %v334_v32, %v333_v31 }
 0x12c   : > { %v336_v34 = vrot.slane %v335_v33, 1 }
 0x12e   : > { %v337_v35 = vadd.f32 %v336_v34, %v335_v33 }
 0x130   : > { %339 = vst.msk [vmem:[%s276_s16] sm:$0x1] %vm338_vm3, %v337_v35 }
 0x131   : > { %619 = shalt.err (!%p616_p10)
}
 0x132   : > { %s620_s14 = scalar_lea.hbm %s889_s10, 16  ;;  %s624_s7 = scalar_lea.hbm %s936_s4, 64 }
 0x133   : > { %p621_p11 = scmp.ne.s32.totalorder %s889_s10, %s620_s14  ;;  %p625_p9 = scmp.lt.u32.totalorder %s889_s10, %s936_s4 }
 0x134   : > { %p626_p2 = scmp.lt.u32.totalorder %s624_s7, %s620_s14  ;;  %p628_p12 = scmp.lt.u32.totalorder %s620_s14, %s889_s10 }
 0x135   : > { %p622_p1 = pnand %p621_p11, %p950_p4 }
 0x136   : > { %p627_p6 = por %p626_p2, %p625_p9 }
 0x137   : > { %p623_p3 = pneg %p622_p1 }
 0x138   : > { %p629_p5 = por %p628_p12, %p627_p6 }
 0x13a   : > { %p630_p7 = pnand %p629_p5, %p623_p3 }
 0x13c   : > { %633 = shalt.err (!%p630_p7)
}
 0x13d   : > { %495 = dma.vmem_to_hbm [thread:$0]  (%p950_p4), %s891_s23, 16, %s889_s10, %s343_s17  }
 0x13e PF: > { %p509_p8 = scmp.ge.s32.totalorder %s676_s21, 2  ;;  %s374_s11 = sand.u32 1, %s664_s18  }
 0x13f   : > { %p951_p13 = scmp.ne.s32.totalorder %s943_s6, 0  ;;  %s375_s16 = scalar_lea.sflag [#allocation4], %s374_s11 }
 0x141   : > { %p505_p0 = pnand %p509_p8, %p951_p13 }
 0x143   : > { %659 = dma.done.wait (!%p505_p0), %s375_s16, 16  }
 0x144   : > { %661 = vsyncadd (!%p505_p0), %s375_s16, 4294967280  ;;  %p22_p10 = scmp.ge.s32.totalorder %s736_s24, 6   ;;  %s952_s18 = smov %s668_s19 }
 0x145   : > { %s953_s19 = smov %s672_s20  ;;  %s954_s20 = smov %s748_s27 }
 0x146   : > { %s955_s21 = smov %s736_s24  ;;  %24 = sbr.rel (!%p22_p10) target bundleno = 7 (0x7), region = 106 }
 0x14d   :  { %386 = vsyncpa [#allocation3], 1 }
 0x14e   :  { %388 = vsyncpa [#allocation3 + $0x1], 1 }
 0x14f   :  { %389 = vsyncpa [#allocation6], 1 }
 0x150   :  { %391 = vsyncpa [#allocation6 + $0x1], 1 }
 0x151   :  { %392 = vsyncpa [#allocation4], 1 }
 0x152   :  { %394 = vsyncpa [#allocation4 + $0x1], 1 }

</bundles_post_ra>
